<compile_context>
chip_gen: v7x
topology: tpu7x:2x2x1
jax: 0.10.0
libtpu: 0.0.40
codegen_flags: <defaults>
</compile_context>

<pallas_src>
import functools

import jax
import jax.numpy as jnp
from jax.experimental import pallas as pl
from jax.experimental.pallas import tpu as pltpu


# ---------------------------------------------------------------------------
# Kernel
# ---------------------------------------------------------------------------
def _bn_pad_kernel(scale_ref, shift_ref, padv_ref, x_ref, o_ref, *, pad):
    """One (Cb, H, W) input block -> one (Cb, H+2p, W+2p) padded output block."""
    cb, h, w = x_ref.shape

    if pad > 0:
        # Single full-block, full-row border fill.  The interior is overwritten
        # below; the overwrite happens in VMEM so it adds no HBM traffic.
        o_ref[...] = jnp.broadcast_to(padv_ref[...], o_ref.shape).astype(o_ref.dtype)

    # BN computed right before its (single) store -> short live range.
    # Compute dtype == scale_ref.dtype (f32, or bf16 on chips with bf16 VALU).
    bn = (x_ref[...].astype(scale_ref.dtype) * scale_ref[...]
          + shift_ref[...]).astype(o_ref.dtype)

    if pad == 0:
        o_ref[...] = bn                              # plain BN, aligned store
    else:
        o_ref[:, pad:pad + h, pad:pad + w] = bn      # single interior store


# ---------------------------------------------------------------------------
# Tiling / budgeting helpers
# ---------------------------------------------------------------------------
def _round_up(x, m):
    return -(-x // m) * m


def _sublane(itemsize):
    return {4: 8, 2: 16, 1: 32}.get(itemsize, 8)


def _tiled_plane_bytes(rows, cols, itemsize):
    """VMEM bytes of one (rows, cols) plane after (sublane, 128) tile padding."""
    sub = _sublane(itemsize)
    return _round_up(max(rows, 1), sub) * _round_up(max(cols, 1), 128) * itemsize


def _vmem_plan():
    """(vmem_limit_bytes, double_buffered_working_set_budget) per generation."""
    try:
        phys = pltpu.get_tpu_info().vmem_capacity_bytes
    except Exception:
        phys = 64 * 1024 * 1024                      # conservative: assume v7x
    if phys >= 96 * 1024 * 1024:                     # v5e / v6e: 128 MiB physical
        return 96 * 1024 * 1024, 72 * 1024 * 1024
    return 40 * 1024 * 1024, 26 * 1024 * 1024        # v7x: 64 MiB physical


def _step_bytes(cb, H, W, Hp, Wp, x_itemsize, compute_itemsize):
    """Real (tiled) VMEM working set of one grid step for channel block cb."""
    in_bytes = cb * _tiled_plane_bytes(H, W, x_itemsize)
    out_bytes = cb * _tiled_plane_bytes(Hp, Wp, x_itemsize)
    # Each (cb,1,1) param block pads to cb (sublane x 128) tiles.
    param_bytes = 3 * cb * _tiled_plane_bytes(1, 1, compute_itemsize)
    # Compute-dtype intermediate when it differs from the input dtype.
    tmp_bytes = (cb * _tiled_plane_bytes(H, W, compute_itemsize)
                 if compute_itemsize != x_itemsize else 0)
    # Inputs / outputs / params are double buffered; the intermediate is not.
    return 2 * (in_bytes + out_bytes + param_bytes) + tmp_bytes


def _pick_block_channels(C, N, H, W, Hp, Wp, x_itemsize, compute_itemsize,
                         vmem_budget, min_steps=8):
    divisors = [d for d in range(1, C + 1) if C % d == 0]
    fitting = [d for d in divisors
               if _step_bytes(d, H, W, Hp, Wp, x_itemsize, compute_itemsize)
               <= vmem_budget]
    if not fitting:
        fitting = [1]
    cb = max(fitting)
    # Keep enough grid steps to hide the edge DMAs and feed both v7x cores.
    while N * (C // cb) < min_steps:
        smaller = [d for d in fitting if d < cb]
        if not smaller:
            break
        cb = max(smaller)
    return cb


def _compute_dtype(x_dtype):
    """bf16 math on chips with a bf16 VALU (v6e/v7x); f32 otherwise."""
    if x_dtype == jnp.bfloat16:
        try:
            kind = jax.devices()[0].device_kind.lower()
        except Exception:
            kind = ""
        if ("v5 lite" not in kind and "v5e" not in kind
                and "v5litepod" not in kind):
            return jnp.bfloat16
    return jnp.float32


# ---------------------------------------------------------------------------
# Wrapper
# ---------------------------------------------------------------------------
def bn_and_pad(x, gamma, beta, running_mean, running_var,
               last_conv_bias=None, *, pad_pixels, eps=1e-5):
    """Pallas implementation of BNAndPad.forward (inference-mode BN).

    x: (N, C, H, W); gamma/beta/running_mean/running_var/last_conv_bias: (C,).
    Returns (N, C, H + 2*pad_pixels, W + 2*pad_pixels) in x.dtype.
    """
    N, C, H, W = x.shape
    p = int(pad_pixels)
    Hp, Wp = H + 2 * p, W + 2 * p

    f32 = jnp.float32
    gamma32 = gamma.astype(f32)
    beta32 = beta.astype(f32)
    mean32 = running_mean.astype(f32)
    var32 = running_var.astype(f32)
    cbias32 = (jnp.zeros((C,), f32) if last_conv_bias is None
               else last_conv_bias.astype(f32))

    # Hoisted per-channel math (O(C), done once, in f32).
    inv_std = 1.0 / jnp.sqrt(var32 + jnp.asarray(eps, f32))
    scale = gamma32 * inv_std                                    # (C,)
    shift = beta32 - mean32 * scale                              # (C,)
    pad_val = beta32 + gamma32 * ((cbias32 - mean32) * inv_std)  # (C,)

    cdtype = _compute_dtype(x.dtype)
    scale = scale.astype(cdtype).reshape(C, 1, 1)
    shift = shift.astype(cdtype).reshape(C, 1, 1)
    pad_val = pad_val.astype(cdtype).reshape(C, 1, 1)

    vmem_limit, vmem_budget = _vmem_plan()
    Cb = _pick_block_channels(C, N, H, W, Hp, Wp,
                              x.dtype.itemsize, jnp.dtype(cdtype).itemsize,
                              vmem_budget)

    # Grid order (C//Cb, N): param block index is constant across inner-N
    # steps, so the (Cb,1,1) params are not re-DMAed every step.
    grid = (C // Cb, N)

    kernel = functools.partial(_bn_pad_kernel, pad=p)

    return pl.pallas_call(
        kernel,
        out_shape=jax.ShapeDtypeStruct((N, C, Hp, Wp), x.dtype),
        grid_spec=pltpu.PrefetchScalarGridSpec(
            num_scalar_prefetch=0,
            grid=grid,
            in_specs=[
                pl.BlockSpec((Cb, 1, 1), lambda c, n: (c, 0, 0)),   # scale
                pl.BlockSpec((Cb, 1, 1), lambda c, n: (c, 0, 0)),   # shift
                pl.BlockSpec((Cb, 1, 1), lambda c, n: (c, 0, 0)),   # pad value
                pl.BlockSpec((None, Cb, H, W), lambda c, n: (n, c, 0, 0)),
            ],
            out_specs=pl.BlockSpec((None, Cb, Hp, Wp), lambda c, n: (n, c, 0, 0)),
        ),
        compiler_params=pltpu.CompilerParams(
            dimension_semantics=("parallel", "parallel"),
            vmem_limit_bytes=vmem_limit),
    )(scale, shift, pad_val, x)


# ---------------------------------------------------------------------------
# Reference & self-test
# ---------------------------------------------------------------------------
def _reference(x, gamma, beta, mean, var, cbias, pad_pixels, eps):
    """Pure-JAX transliteration of the PyTorch forward (eval-mode BN), in f32."""
    x = x.astype(jnp.float32)
    N, C, H, W = x.shape
    inv_std = 1.0 / jnp.sqrt(var + eps)
    out = ((x - mean[None, :, None, None]) * (gamma * inv_std)[None, :, None, None]
           + beta[None, :, None, None])
    p = pad_pixels
    if p > 0:
        bias = -mean + cbias
        pad_values = beta + gamma * (bias * inv_std)
        values = pad_values.reshape(1, -1, 1, 1)
        w_values = jnp.broadcast_to(values, (N, C, p, W))
        out = jnp.concatenate([w_values, out, w_values], axis=2)
        h_values = jnp.broadcast_to(values, (N, C, H + 2 * p, p))
        out = jnp.concatenate([h_values, out, h_values], axis=3)
    return out


if __name__ == "__main__":
    key = jax.random.PRNGKey(0)
    k_x, k_g, k_b, k_m, k_v, k_cb = jax.random.split(key, 6)

    N, C, H, W = 2, 4, 16, 16
    pad_pixels = 2
    eps = 1e-5

    x = jax.random.normal(k_x, (N, C, H, W), dtype=jnp.float32)
    gamma = 1.0 + 0.1 * jax.random.normal(k_g, (C,), dtype=jnp.float32)   # bn.weight
    beta = 0.1 * jax.random.normal(k_b, (C,), dtype=jnp.float32)          # bn.bias
    running_mean = 0.2 * jax.random.normal(k_m, (C,), dtype=jnp.float32)
    running_var = jnp.abs(jax.random.normal(k_v, (C,), dtype=jnp.float32)) + 0.5
    last_conv_bias = 0.05 * jax.random.normal(k_cb, (C,), dtype=jnp.float32)

    # Case 1: pad=2 with a last-conv bias (f32).
    out = bn_and_pad(x, gamma, beta, running_mean, running_var,
                     last_conv_bias, pad_pixels=pad_pixels, eps=eps)
    out = jax.block_until_ready(out)
    ref = _reference(x, gamma, beta, running_mean, running_var,
                     last_conv_bias, pad_pixels, eps)
    assert out.shape == (N, C, H + 2 * pad_pixels, W + 2 * pad_pixels), out.shape
    assert jnp.allclose(out, ref, rtol=1e-5, atol=1e-5), (
        float(jnp.max(jnp.abs(out - ref))))

    # Case 2: pad=1, no last-conv bias (f32).
    out2 = bn_and_pad(x, gamma, beta, running_mean, running_var,
                      None, pad_pixels=1, eps=eps)
    out2 = jax.block_until_ready(out2)
    ref2 = _reference(x, gamma, beta, running_mean, running_var,
                      jnp.zeros((C,), jnp.float32), 1, eps)
    assert jnp.allclose(out2, ref2, rtol=1e-5, atol=1e-5), (
        float(jnp.max(jnp.abs(out2 - ref2))))

    # Case 3: bf16 input, pad=2 (exercises bf16 compute path on v6e/v7x,
    # f32 path on v5e).  Loose tolerance for bf16 rounding.
    x_bf16 = x.astype(jnp.bfloat16)
    out3 = bn_and_pad(x_bf16, gamma, beta, running_mean, running_var,
                      last_conv_bias, pad_pixels=pad_pixels, eps=eps)
    out3 = jax.block_until_ready(out3)
    ref3 = _reference(x_bf16, gamma, beta, running_mean, running_var,
                      last_conv_bias, pad_pixels, eps)
    assert out3.dtype == jnp.bfloat16, out3.dtype
    assert jnp.allclose(out3.astype(jnp.float32), ref3, rtol=5e-2, atol=1e-1), (
        float(jnp.max(jnp.abs(out3.astype(jnp.float32) - ref3))))

    print("KERNEL_OK")
</pallas_src>

<mosaic_0001>
module attributes {stable_mosaic.version = 11 : i64} {
  func.func @_bn_pad_kernel(%arg0: i32, %arg1: i32, %arg2: memref<1x1x1xf32, #tpu.memory_space<vmem>>, %arg3: memref<1x1x1xf32, #tpu.memory_space<vmem>>, %arg4: memref<1x1x1xf32, #tpu.memory_space<vmem>>, %arg5: memref<1x1x16x16xf32, #tpu.memory_space<vmem>>, %arg6: memref<1x1x20x20xf32, #tpu.memory_space<vmem>>) attributes {dimension_semantics = [#tpu.dimension_semantics<parallel>, #tpu.dimension_semantics<parallel>], iteration_bounds = array<i64: 4, 2>, scalar_prefetch = 0 : i64, scratch_operands = 0 : i64, tpu.core_type = #tpu.core_type<tc>, window_params = [{transform_indices = @transform_0, window_bounds = array<i64: 1, 1, 1>}, {transform_indices = @transform_1, window_bounds = array<i64: 1, 1, 1>}, {transform_indices = @transform_2, window_bounds = array<i64: 1, 1, 1>}, {transform_indices = @transform_3, window_bounds = array<i64: 1, 1, 16, 16>}, {transform_indices = @transform_4, window_bounds = array<i64: 1, 1, 20, 20>}]} {
    %c0 = arith.constant 0 : index
    %c0_0 = arith.constant 0 : index
    %c0_1 = arith.constant 0 : index
    %0 = vector.load %arg4[%c0, %c0_0, %c0_1] : memref<1x1x1xf32, #tpu.memory_space<vmem>>, vector<1x1x1xf32>
    %1 = vector.shape_cast %0 : vector<1x1x1xf32> to vector<1x1x1xf32>
    %2 = vector.broadcast %1 : vector<1x1x1xf32> to vector<1x20x20xf32>
    %c0_2 = arith.constant 0 : index
    %c0_3 = arith.constant 0 : index
    %c0_4 = arith.constant 0 : index
    %c0_5 = arith.constant 0 : index
    %3 = vector.load %arg6[%c0_2, %c0_3, %c0_4, %c0_5] : memref<1x1x20x20xf32, #tpu.memory_space<vmem>>, vector<1x1x20x20xf32>
    %4 = vector.shape_cast %3 : vector<1x1x20x20xf32> to vector<1x20x20xf32>
    %5 = vector.shape_cast %2 : vector<1x20x20xf32> to vector<1x1x20x20xf32>
    tpu.vector_store %arg6[%c0_2, %c0_3, %c0_4, %c0_5], %5 {strides = array<i32>} : memref<1x1x20x20xf32, #tpu.memory_space<vmem>>, vector<1x1x20x20xf32>,
    %c0_6 = arith.constant 0 : index
    %c0_7 = arith.constant 0 : index
    %c0_8 = arith.constant 0 : index
    %c0_9 = arith.constant 0 : index
    %6 = vector.load %arg5[%c0_6, %c0_7, %c0_8, %c0_9] : memref<1x1x16x16xf32, #tpu.memory_space<vmem>>, vector<1x1x16x16xf32>
    %7 = vector.shape_cast %6 : vector<1x1x16x16xf32> to vector<1x16x16xf32>
    %c0_10 = arith.constant 0 : index
    %c0_11 = arith.constant 0 : index
    %c0_12 = arith.constant 0 : index
    %8 = vector.load %arg2[%c0_10, %c0_11, %c0_12] : memref<1x1x1xf32, #tpu.memory_space<vmem>>, vector<1x1x1xf32>
    %9 = vector.broadcast %8 : vector<1x1x1xf32> to vector<1x16x16xf32>
    %10 = arith.mulf %7, %9 : vector<1x16x16xf32>
    %c0_13 = arith.constant 0 : index
    %c0_14 = arith.constant 0 : index
    %c0_15 = arith.constant 0 : index
    %11 = vector.load %arg3[%c0_13, %c0_14, %c0_15] : memref<1x1x1xf32, #tpu.memory_space<vmem>>, vector<1x1x1xf32>
    %12 = vector.broadcast %11 : vector<1x1x1xf32> to vector<1x16x16xf32>
    %13 = arith.addf %10, %12 : vector<1x16x16xf32>
    %c0_16 = arith.constant 0 : index
    %c0_17 = arith.constant 0 : index
    %c2 = arith.constant 2 : index
    %c2_18 = arith.constant 2 : index
    %14 = vector.load %arg6[%c0_16, %c0_17, %c2, %c2_18] : memref<1x1x20x20xf32, #tpu.memory_space<vmem>>, vector<1x1x16x16xf32>
    %15 = vector.shape_cast %14 : vector<1x1x16x16xf32> to vector<1x16x16xf32>
    %16 = vector.shape_cast %13 : vector<1x16x16xf32> to vector<1x1x16x16xf32>
    tpu.vector_store %arg6[%c0_16, %c0_17, %c2, %c2_18], %16 {strides = array<i32>} : memref<1x1x20x20xf32, #tpu.memory_space<vmem>>, vector<1x1x16x16xf32>,
    return
  }
  func.func @transform_0(%arg0: i32, %arg1: i32) -> (i32, i32, i32) {
    %c0_i32 = arith.constant 0 : i32
    %c0_i32_0 = arith.constant 0 : i32
    %c0_i32_1 = arith.constant 0 : i32
    return %arg0, %c0_i32, %c0_i32_0 : i32, i32, i32
  }
  func.func @transform_1(%arg0: i32, %arg1: i32) -> (i32, i32, i32) {
    %c0_i32 = arith.constant 0 : i32
    %c0_i32_0 = arith.constant 0 : i32
    %c0_i32_1 = arith.constant 0 : i32
    return %arg0, %c0_i32, %c0_i32_0 : i32, i32, i32
  }
  func.func @transform_2(%arg0: i32, %arg1: i32) -> (i32, i32, i32) {
    %c0_i32 = arith.constant 0 : i32
    %c0_i32_0 = arith.constant 0 : i32
    %c0_i32_1 = arith.constant 0 : i32
    return %arg0, %c0_i32, %c0_i32_0 : i32, i32, i32
  }
  func.func @transform_3(%arg0: i32, %arg1: i32) -> (i32, i32, i32, i32) {
    %c0_i32 = arith.constant 0 : i32
    %c0_i32_0 = arith.constant 0 : i32
    %c0_i32_1 = arith.constant 0 : i32
    return %arg1, %arg0, %c0_i32, %c0_i32_0 : i32, i32, i32, i32
  }
  func.func @transform_4(%arg0: i32, %arg1: i32) -> (i32, i32, i32, i32) {
    %c0_i32 = arith.constant 0 : i32
    %c0_i32_0 = arith.constant 0 : i32
    %c0_i32_1 = arith.constant 0 : i32
    return %arg1, %arg0, %c0_i32, %c0_i32_0 : i32, i32, i32, i32
  }
}

</mosaic_0001>

<bundles_post_ra>
// kernel: tpu_custom_call.1
= control target key start
LH: loop header
LB: loop body
LE: loop exit
PB: predicated region body
PF: predicated region fallthrough
CT: control target
= control target key end

     0   :  { %9 = vsyncpa [#allocation3], 0  ;;  %s854_s0 = inlined_call_operand.vmem [shape: f32[4,1,1], index: 0, kind: input, shape index: {}]   ;;  %s855_s1 = inlined_call_operand.vmem [shape: f32[4,1,1], index: 1, kind: input, shape index: {}]   ;;  %s856_s2 = inlined_call_operand.vmem [shape: f32[4,1,1], index: 2, kind: input, shape index: {}]   ;;  %s857_s3 = inlined_call_operand.hbm [shape: f32[2,4,16,16], index: 3, kind: input, shape index: {}]   ;;  %s858_s4 = inlined_call_operand.vmem [shape: f32[2,4,20,20], index: 4, kind: output, shape index: {}]  }
   0x1   :  { %11 = vsyncpa [#allocation3 + $0x1], 0  ;;  %s689_s15 = smov 0   ;;  %s691_s16 = smov 0  }
   0x2   :  { %s693_s17 = smov 0   ;;  %s695_s18 = smov 0  }
   0x3   :  { %s697_s19 = smov 0   ;;  %s699_s20 = smov 0  }
   0x4   :  { %s701_s21 = smov 0   ;;  %s703_s22 = smov 0  }
   0x5 LB: > { %s466_s23 = sadd.s32 4294967295, %s657_s22   ;;  %s26_s24 = sadd.s32 1, %s649_s20  ;;  %s657_s22 = sphi %s703_s22, %s17_s22   ;;  %s653_s21 = sphi %s701_s21, %s872_s21   ;;  %s649_s20 = sphi %s699_s20, %s871_s20   ;;  %s645_s19 = sphi %s697_s19, %s870_s19   ;;  %s641_s18 = sphi %s695_s18, %s869_s18   ;;  %s637_s17 = sphi %s693_s17, %s868_s17   ;;  %s633_s16 = sphi %s691_s16, %s867_s16   ;;  %s629_s15 = sphi %s689_s15, %s866_s15  }
   0x6   : > { %p27_p0 = scmp.ge.s32.totalorder %s26_s24, 2  ;;  %s29_s25 = sadd.s32 1, %s653_s21 }
   0x7   : > { %s116_s26 = sadd.s32 1, %s637_s17  ;;  %p123_p1 = scmp.ne.s32.totalorder %s637_s17, %s633_s16 }
   0x8   : > { %s874_s24 = smov (%p27_p0, %s26_s24), 0  ;;  %s876_s25 = smov (!%p27_p0, %s29_s25), %s653_s21 }
   0x9   : > { %s111_s27 = ssub.s32 %s649_s20, %s874_s24  ;;  %p124_p2 = scmp.eq.s32.totalorder %s657_s22, 0 }
   0xa   : > { %p31_p3 = scmp.ge.s32.totalorder %s876_s25, 4  ;;  %p129_p4 = scmp.ne.s32.totalorder %s633_s16, %s629_s15 }
   0xb   : > { %p740_p5 = por %p124_p2, %p123_p1  ;;  %p130_p6 = scmp.eq.s32.totalorder %s466_s23, 0 }
   0xc   : > { %s878_s25 = smov (%p31_p3, %s876_s25), 0  ;;  %p490_p8 = scmp.lt.s32.totalorder %s657_s22, 8 }
   0xd   : > { %861 = sst [smem:[#allocation5_spill]] %s878_s25  ;;  %p746_p7 = por %p130_p6, %p129_p4 }
   0xe   : > { %s112_s30 = ssub.s32 %s653_s21, %s878_s25  ;;  %s199_s6 = sand.u32 1, %s637_s17  }
   0xf   : > { %s113_s5 = sor.u32 %s112_s30, %s111_s27  ;;  %s470_s7 = sshll.u32 %s199_s6, 4 }
  0x10   : > { %p114_p9 = scmp.eq.s32.totalorder %s113_s5, 0  ;;  %s471_s8 = sshll.u32 %s653_s21, 1 }
  0x11   : > { %s472_s10 = sshll.u32 %s649_s20, 3  ;;  %s203_s12 = scalar_lea.vmem [#allocation2], %s470_s7 }
  0x12   : > { %s756_s9 = scalar_select %p114_p9, %s637_s17, %s116_s26  }
  0x13   : > { %s209_s11 = sadd.s32 %s472_s10, %s471_s8  ;;  %s212_s13 = sshll.u32 %s203_s12, 4  ;;  %s759_s13 = int_to_ptr.vmem [resolvable:$true] %s212_s13 }
  0x14   : > { %s473_s14 = sshll.u32 %s209_s11, 7  ;;  %p770_p10 = pnand %p490_p8, %p740_p5 }
  0x15   : > { %s764_s25 = scalar_lea.hbm %s857_s3, %s473_s14  ;;  %s775_s27 = scalar_lea.sflag [#allocation3], %s199_s6 }
  0x16   : > { %s561_s30 = scalar_lea.hbm %s764_s25, 256  ;;  %p563_p13 = pneg %p770_p10 }
  0x17   : > { %p562_p12 = scmp.ne.s32.totalorder %s764_s25, %s561_s30  ;;  %s566_s7 = scalar_lea.hbm %s857_s3, 2048 }
  0x18   : > { %p567_p2 = scmp.lt.u32.totalorder %s764_s25, %s857_s3  ;;  %p568_p3 = scmp.lt.u32.totalorder %s566_s7, %s561_s30 }
  0x19   : > { %p564_p0 = pnand %p563_p13, %p562_p12  ;;  %p570_p5 = scmp.lt.u32.totalorder %s561_s30, %s764_s25 }
  0x1a   : > { %p569_p4 = por %p568_p3, %p567_p2 }
  0x1b   : > { %p565_p1 = pneg %p564_p0 }
  0x1c   : > { %p571_p6 = por %p570_p5, %p569_p4 }
  0x1e   : > { %p572_p8 = pnand %p571_p6, %p565_p1 }
  0x20   : > { %575 = shalt.err (!%p572_p8)
}
  0x21   : > { %s576_s6 = scalar_lea.vmem %s759_s13, 256  ;;  %s659_s11 = smov [#allocation2]  }
  0x22   : > { %p577_p9 = scmp.ne.s32.totalorder %s759_s13, %s576_s6  ;;  %s581_s12 = sshll.u32 %s659_s11, 4  ;;  %s582_s12 = int_to_ptr.vmem [resolvable:$false] %s581_s12 }
  0x23   : > { %s583_s14 = scalar_lea.vmem %s582_s12, 512  ;;  %p584_p11 = scmp.lt.s32.totalorder %s759_s13, %s582_s12 }
  0x24   : > { %p579_p12 = pnand %p577_p9, %p563_p13  ;;  %p585_p2 = scmp.lt.s32.totalorder %s583_s14, %s576_s6 }
  0x26   : > { %p580_p0 = pneg %p579_p12  ;;  %p586_p3 = por %p585_p2, %p584_p11 }
  0x28   : > { %p587_p4 = pnand %p586_p3, %p580_p0 }
  0x2a   : > { %590 = shalt.err (!%p587_p4)
}
  0x2b   : > { %s660_s15 = smov 128   ;;  %s661_s23 = smov 8  }
  0x2c   : > { %489 = dma.hbm_to_vmem [thread:$0]  (!%p770_p10), %s764_s25, 256, %s759_s13, %s775_s27, %s660_s15, %s660_s15, %s661_s23  }
  0x2d   : > { %p220_p13 = scmp.lt.s32.totalorder %s657_s22, 9  ;;  %p864_p1 = scmp.ge.s32.totalorder %s657_s22, 1 }
  0x2f   : > { %p221_p5 = pnand %p864_p1, %p220_p13 }
  0x30   : > { %s226_s30 = sand.u32 (!%p221_p5), 1, %s633_s16  }
  0x31   : > { %224 = sbr.rel (%p221_p5) target bundleno = 312 (0x138), region = 36  ;;  %s807_s28 = sshll.u32 (!%p221_p5), %s226_s30, 4 }
  0x32   : > { %s227_s5 = scalar_lea.sflag (!%p221_p5), [#allocation3], %s226_s30  ;;  %s230_s7 = scalar_lea.vmem (!%p221_p5), [#allocation2], %s807_s28 }
  0x38   : > { %624 = dma.done.wait (%p746_p7), %s227_s5, 256  }
  0x39   : > { %626 = vsyncadd (%p746_p7), %s227_s5, 4294967040  ;;  %p268_p10 = scmp.lt.s32.totalorder %s645_s19, 3  ;;  %v662_v0 = vmov 0   ;;  %p277_p7 = scmp.lt.s32.totalorder %s641_s18, 1  ;;  %vm296_vm0 = vcmask 162816   ;;  %vm299_vm1 = vcmask 158720  }
  0x3a   : > { %559 = vset.pattern.permute.xlu0 %v662_v0  ;;  %560 = vset.pattern.permute.xlu1 %v662_v0  ;;  %v301_v5 = vld [vmem:[%s230_s7] sm:$0xff]  ;;  %v302_v6 = vld [vmem:[%s230_s7 + $0x8] sm:$0xff]  ;;  %vm335_vm2 = vcmask 146448  }
  0x3b   : > { %s880_s19 = smov (!%p268_p10, %s645_s19), 3  ;;  %s882_s18 = smov (!%p277_p7, %s641_s18), 1 }
  0x3c   : > { %s270_s26 = scalar_lea.vmem %s854_s0, %s880_s19  ;;  %s276_s10 = scalar_lea.vmem %s856_s2, %s880_s19 }
  0x3d   : > { %s273_s11 = scalar_lea.vmem %s855_s1, %s880_s19  ;;  %v478_v1 = vld [vmem:[%s270_s26] ss:$0 sm:$0xff]  ;;  %s482_s12 = smul.u32 3, %s880_s19 }
  0x3e   : > { %v477_v2 = vld [vmem:[%s276_s10] ss:$0 sm:$0xff]  ;;  %310 = vperm.xlu0 %559, %v478_v1   ;;  %s483_s14 = smul.u32 12, %s882_s18  ;;  %s663_s18 = smov 2  }
  0x3f   : > { %293 = vperm.xlu1 %560, %v477_v2   ;;  %v479_v3 = vld [vmem:[%s273_s11] ss:$0 sm:$0xff] }
  0x40   : > { %s283_s15 = sadd.s32 %s483_s14, %s482_s12 }
  0x41   : > { %s476_s23 = sshll.u32 %s283_s15, 3 }
  0x42   : > { %322 = vperm.xlu0 %559, %v479_v3   ;;  %s285_s5 = scalar_lea.vmem %s858_s4, %s476_s23 }
  0xbd   : > { %v311_v4 = vpop.permute.xlu0 %310 }
  0xbe   : > { %v294_v7 = vpop.permute.xlu1 %293  ;;  %v313_v8 = vmul.f32 %v311_v4, %v301_v5  ;;  %v314_v9 = vmul.f32 %v311_v4, %v302_v6 }
  0xbf   : > { %297 = vst.msk [vmem:[%s285_s5] sm:$0xff] %vm296_vm0, %v294_v7  ;;  %298 = vst.msk [vmem:[%s285_s5 + $0x8] sm:$0xff] %vm296_vm0, %v294_v7 }
  0xc0   : > { %300 = vst.msk [vmem:[%s285_s5 + $0x10] sm:$0xf] %vm299_vm1, %v294_v7 }
  0xc1   : > { %v323_v10 = vpop.permute.xlu0 %322 }
  0xc2   : > { %v325_v11 = vadd.f32 %v323_v10, %v313_v8  ;;  %v326_v12 = vadd.f32 %v323_v10, %v314_v9 }
  0xc4   : > { %331 = vrot.lane.b32.xlu0 %v326_v12, %s663_s18  ;;  %329 = vrot.lane.b32.xlu1 %v325_v11, %s663_s18 }
 0x136   : > { %v332_v13 = vpop.permute.xlu0 %331  ;;  %v330_v14 = vpop.permute.xlu1 %329 }
 0x137   : > { %337 = vst.msk [vmem:[%s285_s5 + $0xa] sm:$0xff] %vm335_vm2, %v332_v13  ;;  %336 = vst.msk [vmem:[%s285_s5 + $0x2] sm:$0xff] %vm335_vm2, %v330_v14 }
 0x138 PF: > { %s17_s22 = sadd.s32 1, %s657_s22   ;;  %s865_s7 = sld [smem:[#allocation5_spill]] }
 0x139   : > { %p14_p11 = scmp.ge.s32.totalorder %s17_s22, 10   ;;  %s866_s15 = smov %s633_s16 }
 0x13a   : > { %s867_s16 = smov %s637_s17  ;;  %s868_s17 = smov %s756_s9 }
 0x13b   : > { %s869_s18 = smov %s649_s20  ;;  %s870_s19 = smov %s653_s21 }
 0x13c   : > { %s871_s20 = smov %s874_s24  ;;  %16 = sbr.rel (!%p14_p11) target bundleno = 5 (0x5), region = 85 }
 0x13e   : > { %s872_s21 = smov %s865_s7 }
 0x143   :  { %367 = vsyncpa [#allocation3], 1 }
 0x144   :  { %369 = vsyncpa [#allocation3 + $0x1], 1 }

</bundles_post_ra>
